<compile_context>
chip_gen: v5e
topology: v5e:2x2
jax: 0.10.0
libtpu: 0.0.40
codegen_flags: <defaults>
</compile_context>

<pallas_src>
import functools
import math

import jax
import jax.numpy as jnp
from jax.experimental import pallas as pl
from jax.experimental.pallas import tpu as pltpu

# ----------------------- module-consistent configuration ---------------------
OBS_SHAPE = (1, 3, 240)          # (C=1, H=3, W=240) lidar obs (PyTorch NCHW)
ROBOT_GOAL_STATE_DIM = 4
ACTION_DIM = 2
HIDDEN_DIM = 64
ENC_FEAT_DIM = 32
LOG_STD_MIN = -20.0
LOG_STD_MAX = 2.0
ACTION_LOW = jnp.array([-2.0, -1.0], dtype=jnp.float32)
ACTION_HIGH = jnp.array([2.0, 3.0], dtype=jnp.float32)
BATCH = 2

# conv geometry derived from the PyTorch Encoder:
#   conv1 = Conv2d(1, 32, kernel_size=(2, 20), stride=(1, 10)); pool1 = MaxPool2d((1, 5))
#   conv2 = Conv2d(32, 32, kernel_size=(2, 2), stride=(1, 1)); pool2 = MaxPool2d((1, 2))
C1_OUT = 32
K1_H, K1_W, S1_W = 2, 20, 10
P1_W = 5
C2_OUT = 32
K2_H, K2_W = 2, 2
P2_W = 2

H0, W0 = OBS_SHAPE[1], OBS_SHAPE[2]
OH1 = H0 - K1_H + 1               # 2
OW1 = (W0 - K1_W) // S1_W + 1     # 23
PW1 = OW1 // P1_W                 # 4  pool1 windows (full conv)
OH2 = OH1 - K2_H + 1              # 1
OW2 = PW1 - K2_W + 1              # 3  conv2 width positions (full conv)
PW2 = OW2 // P2_W                 # 1  pool2 windows
FLATTEN = C2_OUT * OH2 * PW2      # 32 (matches Encoder._get_flatten_size)

# only the positions the network output actually depends on:
POOL2_POS = PW2 * P2_W            # 2 conv2 width positions read by pool2
PW1_USED = POOL2_POS + K2_W - 1   # 3 pool1 windows read by conv2 (pw1 = 3 dropped)

# packed head output: [mu(2) | pi(2) | log_pi(1) | log_std(2) | pad(1)]
PACKED = 3 * ACTION_DIM + 2

# -------------- packed weight buffer layout: (TOTAL_ROWS, 128) f32 -----------
# every block starts on an 8-row (sublane) boundary; unused lanes are zero.
WCOLS = 128
R_C1W = 0                                   # conv1_w   (40, 32)
R_C2W = R_C1W + K1_H * K1_W                 # conv2_w   (128, 32)   @ 40
R_E1W = R_C2W + K2_H * K2_W * C1_OUT        # enc_fc1_w (32, 64)    @ 168
R_T1WF = R_E1W + FLATTEN                    # folded trunk_fc1 feat (64, 64) @ 200
R_T1WG = R_T1WF + HIDDEN_DIM                # trunk_fc1 goal (4, 64) @ 264 (pad->8)
R_T2W = R_T1WG + 8                          # trunk_fc2_w (64, 64)  @ 272
R_HEADW = R_T2W + HIDDEN_DIM                # head_w mu|ls (64, 4)  @ 336
R_BIAS = R_HEADW + HIDDEN_DIM               # 8 bias/constant rows  @ 400
TOTAL_ROWS = R_BIAS + 8                     # 408 rows -> ~204 KB, one DMA

_VMEM = pl.BlockSpec(memory_space=pltpu.MemorySpace.VMEM)


# ------------------------------ fused kernel ---------------------------------
def _actor_fused_kernel(patches_ref, goal_ref, eps_ref, wpk_ref, out_ref, *, batch):
    f32 = jnp.float32

    # --- recover the weight/bias/constant blocks from the single packed
    # buffer with static slices (zero-cost ref views -> small VMEM loads).
    w1 = wpk_ref[R_C1W:R_C1W + K1_H * K1_W, 0:C1_OUT]                   # (40, 32)
    w2 = wpk_ref[R_C2W:R_C2W + K2_H * K2_W * C1_OUT, 0:C2_OUT]          # (128, 32)
    e1w = wpk_ref[R_E1W:R_E1W + FLATTEN, 0:HIDDEN_DIM]                  # (32, 64)
    t1wf = wpk_ref[R_T1WF:R_T1WF + HIDDEN_DIM, 0:HIDDEN_DIM]            # (64, 64)
    t1wg = wpk_ref[R_T1WG:R_T1WG + ROBOT_GOAL_STATE_DIM, 0:HIDDEN_DIM]  # (4, 64)
    t2w = wpk_ref[R_T2W:R_T2W + HIDDEN_DIM, 0:HIDDEN_DIM]               # (64, 64)
    hw = wpk_ref[R_HEADW:R_HEADW + HIDDEN_DIM, 0:2 * ACTION_DIM]        # (64, 4)
    b1 = wpk_ref[R_BIAS + 0:R_BIAS + 1, 0:C1_OUT]
    b2 = wpk_ref[R_BIAS + 1:R_BIAS + 2, 0:C2_OUT]
    e1b = wpk_ref[R_BIAS + 2:R_BIAS + 3, 0:HIDDEN_DIM]
    t1b = wpk_ref[R_BIAS + 3:R_BIAS + 4, 0:HIDDEN_DIM]
    t2b = wpk_ref[R_BIAS + 4:R_BIAS + 5, 0:HIDDEN_DIM]
    hb = wpk_ref[R_BIAS + 5:R_BIAS + 6, 0:2 * ACTION_DIM]
    sc = wpk_ref[R_BIAS + 6:R_BIAS + 7, 0:ACTION_DIM]                   # action_scale
    bi = wpk_ref[R_BIAS + 7:R_BIAS + 8, 0:ACTION_DIM]                   # action_bias

    # --- conv1 (+ ReLU) as one matmul over the pre-built patch matrix.
    # patches rows are ordered (j, oh1, pw1, b): j = offset inside the 5-wide
    # pool1 window, pw1 in {0,1,2} (only the windows conv2+pool2 consume).
    h1 = jnp.maximum(jnp.dot(patches_ref[...], w1, preferred_element_type=f32) + b1,
                     0.0)                                               # (30B, 32)

    # --- pool1 fused into the conv1 epilogue; result stays in vregs.
    blk = OH1 * PW1_USED * batch                                        # 6B rows
    p1 = h1[0:blk, :]
    for j in range(1, P1_W):
        p1 = jnp.maximum(p1, h1[j * blk:(j + 1) * blk, :])
    # p1 rows ordered (oh1, pw1, b); lanes = conv1 channels.

    # --- conv2 (+ ReLU) + pool2 as ONE matmul.
    # lhs rows = (ow2, b) for the two conv2 width positions pool2 reads;
    # lhs lanes = the four (kh, kw) taps lane-concatenated (4 * 32 = 128).
    # For a tap (kh, kw) the needed rows of p1 are CONTIGUOUS:
    #   rows [kh*PW1_USED*B + kw*B : + POOL2_POS*B]  (order (pw1, b) == (ow2, b)).
    g = PW1_USED * batch
    taps = []
    for kh in range(K2_H):
        for kw in range(K2_W):
            r0 = kh * g + kw * batch
            taps.append(p1[r0:r0 + POOL2_POS * batch, :])               # (2B, 32)
    lhs = jnp.concatenate(taps, axis=-1)                                # (2B, 128)
    acc = jnp.dot(lhs, w2, preferred_element_type=f32)                  # (2B, 32)
    # pool2 = max over the two row halves; relu and max commute, bias inside.
    feat = jnp.maximum(
        jnp.maximum(acc[0:batch, :], acc[batch:POOL2_POS * batch, :]) + b2, 0.0)
    # feat == PyTorch x.view(B, -1): OH2 == PW2 == 1, channels only.

    # --- encoder fc1 -> ReLU.  enc_fc2 (no nonlinearity) is folded offline
    # into t1wf / t1b, so its matmul disappears from the critical path.
    e1 = jnp.maximum(jnp.dot(feat, e1w, preferred_element_type=f32) + e1b, 0.0)

    # --- trunk; torch.cat((feat, goal), -1) folded into split fc1 weights.
    t1 = jnp.maximum(jnp.dot(e1, t1wf, preferred_element_type=f32)
                     + jnp.dot(goal_ref[...], t1wg, preferred_element_type=f32)
                     + t1b, 0.0)
    t2 = jnp.maximum(jnp.dot(t1, t2w, preferred_element_type=f32) + t2b, 0.0)
    # merged mu|log_std head; .chunk(2, dim=-1) == two static lane slices.
    head = jnp.dot(t2, hw, preferred_element_type=f32) + hb             # (B, 4)
    mu = head[:, 0:ACTION_DIM]
    ls = head[:, ACTION_DIM:2 * ACTION_DIM]

    # --- squashed-Gaussian head.
    ls = jnp.clip(ls, LOG_STD_MIN, LOG_STD_MAX)
    std = jnp.exp(ls)
    eps = eps_ref[...]
    x_t = mu + std * eps              # normal.rsample()
    y_t = jnp.tanh(x_t)
    pi = y_t * sc + bi
    # Normal(mu, std).log_prob(x_t); (x_t - mu)/std == eps exactly.
    log_prob = -0.5 * eps * eps - ls - 0.5 * math.log(2.0 * math.pi)
    log_prob = log_prob - jnp.log(sc * (1.0 - y_t * y_t) + 1e-6)
    log_pi = jnp.sum(log_prob, axis=-1, keepdims=True)
    mu_sq = jnp.tanh(mu) * sc + bi

    # --- single packed output store (one unmasked-ish vst, no zero fill).
    out_ref[...] = jnp.concatenate(
        [mu_sq, pi, log_pi, ls, jnp.zeros((batch, 1), f32)], axis=-1)


# ------------------------------ wrapper (glue) --------------------------------
def _conv1_patches(obs_flat):
    """Conv1 im2col via the block trick: stride 10 + kernel 20 => every window
    is two adjacent 10-wide blocks.  Rows are ordered (j, oh1, pw1, b) with
    pw1 restricted to the 3 pool1 windows conv2+pool2 actually read, so
    nothing discarded downstream is ever computed."""
    b = obs_flat.shape[0]
    x = obs_flat.reshape(b, H0, W0)                          # Cin == 1
    xb = x.reshape(b, H0, W0 // S1_W, S1_W)                  # (b, 3, 24, 10)
    nw = PW1_USED * P1_W                                     # 15 conv1 positions
    win = jnp.concatenate([xb[:, :, :nw, :], xb[:, :, 1:nw + 1, :]], axis=-1)
    pat = jnp.concatenate([win[:, kh:kh + OH1] for kh in range(K1_H)], axis=-1)
    pat = pat.reshape(b, OH1, PW1_USED, P1_W, K1_H * K1_W)   # (b, 2, 3, 5, 40)
    pat = jnp.transpose(pat, (3, 1, 2, 0, 4))                # (j, oh, pw, b, k)
    return pat.reshape(P1_W * OH1 * PW1_USED * b, K1_H * K1_W)   # (30*b, 40)


def actor_forward(wpk, obs_flat, robot_goal_state, eps):
    b = obs_flat.shape[0]
    patches1 = _conv1_patches(obs_flat)

    flops = 2 * (patches1.shape[0] * (K1_H * K1_W) * C1_OUT
                 + POOL2_POS * b * (K2_H * K2_W * C1_OUT) * C2_OUT
                 + b * (FLATTEN * HIDDEN_DIM
                        + HIDDEN_DIM * HIDDEN_DIM          # folded trunk fc1 (feat)
                        + ROBOT_GOAL_STATE_DIM * HIDDEN_DIM
                        + HIDDEN_DIM * HIDDEN_DIM          # trunk fc2
                        + HIDDEN_DIM * 2 * ACTION_DIM))    # merged head
    bytes_accessed = 4 * (int(patches1.size) + int(robot_goal_state.size)
                          + int(eps.size) + int(wpk.size) + b * PACKED)

    out = pl.pallas_call(
        functools.partial(_actor_fused_kernel, batch=b),
        out_shape=jax.ShapeDtypeStruct((b, PACKED), jnp.float32),
        in_specs=[_VMEM] * 4,
        out_specs=_VMEM,
        cost_estimate=pl.CostEstimate(flops=flops,
                                      transcendentals=6 * b * ACTION_DIM,
                                      bytes_accessed=bytes_accessed),
    )(patches1, robot_goal_state, eps, wpk)

    mu = out[:, 0:ACTION_DIM]
    pi = out[:, ACTION_DIM:2 * ACTION_DIM]
    log_pi = out[:, 2 * ACTION_DIM:2 * ACTION_DIM + 1]
    log_std = out[:, 2 * ACTION_DIM + 1:3 * ACTION_DIM + 1]
    return mu, pi, log_pi, log_std


# --------------------------- deterministic params ----------------------------
def init_params(key):
    keys = jax.random.split(key, 17)

    def w(k, shape, scale=0.1):
        return (scale * jax.random.normal(k, shape)).astype(jnp.float32)

    p = {}
    # conv weights stored directly in im2col layout ((kh, kw, cin), cout).
    # NOTE: this is NOT PyTorch's Conv2d flattening order; loading real torch
    # checkpoints requires weight.permute(2, 3, 1, 0).reshape(-1, cout).
    p["conv1_w"] = w(keys[0], (K1_H * K1_W * 1, C1_OUT))
    p["conv1_b"] = w(keys[1], (1, C1_OUT))
    p["conv2_w"] = w(keys[2], (K2_H * K2_W * C1_OUT, C2_OUT))
    p["conv2_b"] = w(keys[3], (1, C2_OUT))
    # NOTE: linear weights are stored as (in, out) == torch weight.T; biases
    # as (1, out).  Loading torch checkpoints requires the transpose.
    p["enc_fc1_w"] = w(keys[4], (FLATTEN, HIDDEN_DIM))
    p["enc_fc1_b"] = w(keys[5], (1, HIDDEN_DIM))
    p["enc_fc2_w"] = w(keys[6], (HIDDEN_DIM, ENC_FEAT_DIM))
    p["enc_fc2_b"] = w(keys[7], (1, ENC_FEAT_DIM))
    # trunk fc1 split into feature / goal blocks (folds torch.cat away).
    p["trunk_fc1_wf"] = w(keys[8], (ENC_FEAT_DIM, HIDDEN_DIM))
    p["trunk_fc1_wg"] = w(keys[9], (ROBOT_GOAL_STATE_DIM, HIDDEN_DIM))
    p["trunk_fc1_b"] = w(keys[10], (1, HIDDEN_DIM))
    p["trunk_fc2_w"] = w(keys[11], (HIDDEN_DIM, HIDDEN_DIM))
    p["trunk_fc2_b"] = w(keys[12], (1, HIDDEN_DIM))
    # trunk fc3 split into mu / log_std column blocks (== .chunk(2, -1)).
    p["trunk_fc3_wmu"] = w(keys[13], (HIDDEN_DIM, ACTION_DIM))
    p["trunk_fc3_bmu"] = w(keys[14], (1, ACTION_DIM))
    p["trunk_fc3_wls"] = w(keys[15], (HIDDEN_DIM, ACTION_DIM))
    p["trunk_fc3_bls"] = w(keys[16], (1, ACTION_DIM))
    p["action_scale"] = ((ACTION_HIGH - ACTION_LOW) / 2.0).reshape(1, ACTION_DIM).astype(jnp.float32)
    p["action_bias"] = ((ACTION_HIGH + ACTION_LOW) / 2.0).reshape(1, ACTION_DIM).astype(jnp.float32)
    return p


def pack_params(p):
    """Offline (init-time) transform: fold enc_fc2 into trunk_fc1's feature
    block, merge the mu / log_std heads, and pack every weight / bias /
    constant into ONE 8-row-aligned (TOTAL_ROWS, 128) f32 buffer so the kernel
    does a single weight DMA."""
    t1wf_folded = p["enc_fc2_w"] @ p["trunk_fc1_wf"]                       # (64, 64)
    t1b_folded = p["enc_fc2_b"] @ p["trunk_fc1_wf"] + p["trunk_fc1_b"]     # (1, 64)
    head_w = jnp.concatenate([p["trunk_fc3_wmu"], p["trunk_fc3_wls"]], axis=1)  # (64, 4)
    head_b = jnp.concatenate([p["trunk_fc3_bmu"], p["trunk_fc3_bls"]], axis=1)  # (1, 4)

    buf = jnp.zeros((TOTAL_ROWS, WCOLS), jnp.float32)

    def put(b, row, block):
        r, c = block.shape
        return b.at[row:row + r, 0:c].set(block.astype(jnp.float32))

    buf = put(buf, R_C1W, p["conv1_w"])
    buf = put(buf, R_C2W, p["conv2_w"])
    buf = put(buf, R_E1W, p["enc_fc1_w"])
    buf = put(buf, R_T1WF, t1wf_folded)
    buf = put(buf, R_T1WG, p["trunk_fc1_wg"])
    buf = put(buf, R_T2W, p["trunk_fc2_w"])
    buf = put(buf, R_HEADW, head_w)
    buf = put(buf, R_BIAS + 0, p["conv1_b"])
    buf = put(buf, R_BIAS + 1, p["conv2_b"])
    buf = put(buf, R_BIAS + 2, p["enc_fc1_b"])
    buf = put(buf, R_BIAS + 3, t1b_folded)
    buf = put(buf, R_BIAS + 4, p["trunk_fc2_b"])
    buf = put(buf, R_BIAS + 5, head_b)
    buf = put(buf, R_BIAS + 6, p["action_scale"])
    buf = put(buf, R_BIAS + 7, p["action_bias"])
    return buf


if __name__ == "__main__":
    key = jax.random.PRNGKey(0)
    kp, ko, kg, ke = jax.random.split(key, 4)
    params = init_params(kp)
    wpk = pack_params(params)

    obs = jax.random.normal(
        ko, (BATCH, OBS_SHAPE[0] * OBS_SHAPE[1] * OBS_SHAPE[2]), dtype=jnp.float32)
    robot_goal_state = jax.random.normal(
        kg, (BATCH, ROBOT_GOAL_STATE_DIM), dtype=jnp.float32)
    eps = jax.random.normal(ke, (BATCH, ACTION_DIM), dtype=jnp.float32)

    mu, pi, log_pi, log_std = jax.jit(actor_forward)(wpk, obs,
                                                     robot_goal_state, eps)
    jax.block_until_ready((mu, pi, log_pi, log_std))
    assert mu.shape == (BATCH, ACTION_DIM)
    assert pi.shape == (BATCH, ACTION_DIM)
    assert log_pi.shape == (BATCH, 1)
    assert log_std.shape == (BATCH, ACTION_DIM)
    print("KERNEL_OK")
</pallas_src>

<mosaic_0001>
module attributes {stable_mosaic.version = 11 : i64} {
  func.func @_actor_fused_kernel(%arg0: memref<60x40xf32, #tpu.memory_space<vmem>>, %arg1: memref<2x4xf32, #tpu.memory_space<vmem>>, %arg2: memref<2x2xf32, #tpu.memory_space<vmem>>, %arg3: memref<408x128xf32, #tpu.memory_space<vmem>>, %arg4: memref<2x8xf32, #tpu.memory_space<vmem>>) attributes {dimension_semantics = [], scalar_prefetch = 0 : i64, scratch_operands = 0 : i64, tpu.core_type = #tpu.core_type<tc>} {
    %c0 = arith.constant 0 : index
    %c0_0 = arith.constant 0 : index
    %0 = vector.load %arg3[%c0, %c0_0] : memref<408x128xf32, #tpu.memory_space<vmem>>, vector<40x32xf32>
    %c40 = arith.constant 40 : index
    %c0_1 = arith.constant 0 : index
    %1 = vector.load %arg3[%c40, %c0_1] : memref<408x128xf32, #tpu.memory_space<vmem>>, vector<128x32xf32>
    %c168 = arith.constant 168 : index
    %c0_2 = arith.constant 0 : index
    %2 = vector.load %arg3[%c168, %c0_2] : memref<408x128xf32, #tpu.memory_space<vmem>>, vector<32x64xf32>
    %c200 = arith.constant 200 : index
    %c0_3 = arith.constant 0 : index
    %3 = vector.load %arg3[%c200, %c0_3] : memref<408x128xf32, #tpu.memory_space<vmem>>, vector<64x64xf32>
    %c264 = arith.constant 264 : index
    %c0_4 = arith.constant 0 : index
    %4 = vector.load %arg3[%c264, %c0_4] : memref<408x128xf32, #tpu.memory_space<vmem>>, vector<4x64xf32>
    %c272 = arith.constant 272 : index
    %c0_5 = arith.constant 0 : index
    %5 = vector.load %arg3[%c272, %c0_5] : memref<408x128xf32, #tpu.memory_space<vmem>>, vector<64x64xf32>
    %c336 = arith.constant 336 : index
    %c0_6 = arith.constant 0 : index
    %6 = vector.load %arg3[%c336, %c0_6] : memref<408x128xf32, #tpu.memory_space<vmem>>, vector<64x4xf32>
    %c400 = arith.constant 400 : index
    %c0_7 = arith.constant 0 : index
    %7 = vector.load %arg3[%c400, %c0_7] : memref<408x128xf32, #tpu.memory_space<vmem>>, vector<1x32xf32>
    %c401 = arith.constant 401 : index
    %c0_8 = arith.constant 0 : index
    %8 = vector.load %arg3[%c401, %c0_8] : memref<408x128xf32, #tpu.memory_space<vmem>>, vector<1x32xf32>
    %c402 = arith.constant 402 : index
    %c0_9 = arith.constant 0 : index
    %9 = vector.load %arg3[%c402, %c0_9] : memref<408x128xf32, #tpu.memory_space<vmem>>, vector<1x64xf32>
    %c403 = arith.constant 403 : index
    %c0_10 = arith.constant 0 : index
    %10 = vector.load %arg3[%c403, %c0_10] : memref<408x128xf32, #tpu.memory_space<vmem>>, vector<1x64xf32>
    %c404 = arith.constant 404 : index
    %c0_11 = arith.constant 0 : index
    %11 = vector.load %arg3[%c404, %c0_11] : memref<408x128xf32, #tpu.memory_space<vmem>>, vector<1x64xf32>
    %c405 = arith.constant 405 : index
    %c0_12 = arith.constant 0 : index
    %12 = vector.load %arg3[%c405, %c0_12] : memref<408x128xf32, #tpu.memory_space<vmem>>, vector<1x4xf32>
    %c406 = arith.constant 406 : index
    %c0_13 = arith.constant 0 : index
    %13 = vector.load %arg3[%c406, %c0_13] : memref<408x128xf32, #tpu.memory_space<vmem>>, vector<1x2xf32>
    %c407 = arith.constant 407 : index
    %c0_14 = arith.constant 0 : index
    %14 = vector.load %arg3[%c407, %c0_14] : memref<408x128xf32, #tpu.memory_space<vmem>>, vector<1x2xf32>
    %c0_15 = arith.constant 0 : index
    %c0_16 = arith.constant 0 : index
    %15 = vector.load %arg0[%c0_15, %c0_16] : memref<60x40xf32, #tpu.memory_space<vmem>>, vector<60x40xf32>
    %cst = arith.constant dense<0.000000e+00> : vector<60x32xf32>
    %16 = tpu.matmul %15, %0, %cst {dimension_numbers = #tpu.dot_dimension_numbers<[1], [0], [0], [1], [0, 0, 1, 1], [], []>} : vector<60x40xf32>, vector<40x32xf32>, vector<60x32xf32> -> vector<60x32xf32>
    %17 = vector.broadcast %7 : vector<1x32xf32> to vector<60x32xf32>
    %18 = arith.addf %16, %17 : vector<60x32xf32>
    %cst_17 = arith.constant 0.000000e+00 : f32
    %19 = vector.broadcast %cst_17 : f32 to vector<60x32xf32>
    %20 = arith.maximumf %18, %19 : vector<60x32xf32>
    %21 = vector.extract_strided_slice %20 {offsets = [0, 0], sizes = [12, 32], strides = [1, 1]} : vector<60x32xf32> to vector<12x32xf32>
    %22 = vector.extract_strided_slice %20 {offsets = [12, 0], sizes = [12, 32], strides = [1, 1]} : vector<60x32xf32> to vector<12x32xf32>
    %23 = arith.maximumf %21, %22 : vector<12x32xf32>
    %24 = vector.extract_strided_slice %20 {offsets = [24, 0], sizes = [12, 32], strides = [1, 1]} : vector<60x32xf32> to vector<12x32xf32>
    %25 = arith.maximumf %23, %24 : vector<12x32xf32>
    %26 = vector.extract_strided_slice %20 {offsets = [36, 0], sizes = [12, 32], strides = [1, 1]} : vector<60x32xf32> to vector<12x32xf32>
    %27 = arith.maximumf %25, %26 : vector<12x32xf32>
    %28 = vector.extract_strided_slice %20 {offsets = [48, 0], sizes = [12, 32], strides = [1, 1]} : vector<60x32xf32> to vector<12x32xf32>
    %29 = arith.maximumf %27, %28 : vector<12x32xf32>
    %30 = vector.extract_strided_slice %29 {offsets = [0, 0], sizes = [4, 32], strides = [1, 1]} : vector<12x32xf32> to vector<4x32xf32>
    %31 = vector.extract_strided_slice %29 {offsets = [2, 0], sizes = [4, 32], strides = [1, 1]} : vector<12x32xf32> to vector<4x32xf32>
    %32 = vector.extract_strided_slice %29 {offsets = [6, 0], sizes = [4, 32], strides = [1, 1]} : vector<12x32xf32> to vector<4x32xf32>
    %33 = vector.extract_strided_slice %29 {offsets = [8, 0], sizes = [4, 32], strides = [1, 1]} : vector<12x32xf32> to vector<4x32xf32>
    %34 = tpu.concatenate %30, %31, %32, %33 in 1 : vector<4x32xf32>, vector<4x32xf32>, vector<4x32xf32>, vector<4x32xf32> -> vector<4x128xf32>
    %cst_18 = arith.constant dense<0.000000e+00> : vector<4x32xf32>
    %35 = tpu.matmul %34, %1, %cst_18 {dimension_numbers = #tpu.dot_dimension_numbers<[1], [0], [0], [1], [0, 0, 1, 1], [], []>} : vector<4x128xf32>, vector<128x32xf32>, vector<4x32xf32> -> vector<4x32xf32>
    %36 = vector.extract_strided_slice %35 {offsets = [0, 0], sizes = [2, 32], strides = [1, 1]} : vector<4x32xf32> to vector<2x32xf32>
    %37 = vector.extract_strided_slice %35 {offsets = [2, 0], sizes = [2, 32], strides = [1, 1]} : vector<4x32xf32> to vector<2x32xf32>
    %38 = arith.maximumf %36, %37 : vector<2x32xf32>
    %39 = vector.broadcast %8 : vector<1x32xf32> to vector<2x32xf32>
    %40 = arith.addf %38, %39 : vector<2x32xf32>
    %cst_19 = arith.constant 0.000000e+00 : f32
    %41 = vector.broadcast %cst_19 : f32 to vector<2x32xf32>
    %42 = arith.maximumf %40, %41 : vector<2x32xf32>
    %cst_20 = arith.constant dense<0.000000e+00> : vector<2x64xf32>
    %43 = tpu.matmul %42, %2, %cst_20 {dimension_numbers = #tpu.dot_dimension_numbers<[1], [0], [0], [1], [0, 0, 1, 1], [], []>} : vector<2x32xf32>, vector<32x64xf32>, vector<2x64xf32> -> vector<2x64xf32>
    %44 = vector.broadcast %9 : vector<1x64xf32> to vector<2x64xf32>
    %45 = arith.addf %43, %44 : vector<2x64xf32>
    %cst_21 = arith.constant 0.000000e+00 : f32
    %46 = vector.broadcast %cst_21 : f32 to vector<2x64xf32>
    %47 = arith.maximumf %45, %46 : vector<2x64xf32>
    %cst_22 = arith.constant dense<0.000000e+00> : vector<2x64xf32>
    %48 = tpu.matmul %47, %3, %cst_22 {dimension_numbers = #tpu.dot_dimension_numbers<[1], [0], [0], [1], [0, 0, 1, 1], [], []>} : vector<2x64xf32>, vector<64x64xf32>, vector<2x64xf32> -> vector<2x64xf32>
    %c0_23 = arith.constant 0 : index
    %c0_24 = arith.constant 0 : index
    %49 = vector.load %arg1[%c0_23, %c0_24] : memref<2x4xf32, #tpu.memory_space<vmem>>, vector<2x4xf32>
    %cst_25 = arith.constant dense<0.000000e+00> : vector<2x64xf32>
    %50 = tpu.matmul %49, %4, %cst_25 {dimension_numbers = #tpu.dot_dimension_numbers<[1], [0], [0], [1], [0, 0, 1, 1], [], []>} : vector<2x4xf32>, vector<4x64xf32>, vector<2x64xf32> -> vector<2x64xf32>
    %51 = arith.addf %48, %50 : vector<2x64xf32>
    %52 = vector.broadcast %10 : vector<1x64xf32> to vector<2x64xf32>
    %53 = arith.addf %51, %52 : vector<2x64xf32>
    %cst_26 = arith.constant 0.000000e+00 : f32
    %54 = vector.broadcast %cst_26 : f32 to vector<2x64xf32>
    %55 = arith.maximumf %53, %54 : vector<2x64xf32>
    %cst_27 = arith.constant dense<0.000000e+00> : vector<2x64xf32>
    %56 = tpu.matmul %55, %5, %cst_27 {dimension_numbers = #tpu.dot_dimension_numbers<[1], [0], [0], [1], [0, 0, 1, 1], [], []>} : vector<2x64xf32>, vector<64x64xf32>, vector<2x64xf32> -> vector<2x64xf32>
    %57 = vector.broadcast %11 : vector<1x64xf32> to vector<2x64xf32>
    %58 = arith.addf %56, %57 : vector<2x64xf32>
    %cst_28 = arith.constant 0.000000e+00 : f32
    %59 = vector.broadcast %cst_28 : f32 to vector<2x64xf32>
    %60 = arith.maximumf %58, %59 : vector<2x64xf32>
    %cst_29 = arith.constant dense<0.000000e+00> : vector<2x4xf32>
    %61 = tpu.matmul %60, %6, %cst_29 {dimension_numbers = #tpu.dot_dimension_numbers<[1], [0], [0], [1], [0, 0, 1, 1], [], []>} : vector<2x64xf32>, vector<64x4xf32>, vector<2x4xf32> -> vector<2x4xf32>
    %62 = vector.broadcast %12 : vector<1x4xf32> to vector<2x4xf32>
    %63 = arith.addf %61, %62 : vector<2x4xf32>
    %64 = vector.extract_strided_slice %63 {offsets = [0, 0], sizes = [2, 2], strides = [1, 1]} : vector<2x4xf32> to vector<2x2xf32>
    %65 = vector.extract_strided_slice %63 {offsets = [0, 2], sizes = [2, 2], strides = [1, 1]} : vector<2x4xf32> to vector<2x2xf32>
    %cst_30 = arith.constant -2.000000e+01 : f32
    %cst_31 = arith.constant 2.000000e+00 : f32
    %66 = vector.broadcast %cst_30 : f32 to vector<2x2xf32>
    %67 = arith.maximumf %66, %65 : vector<2x2xf32>
    %68 = vector.broadcast %cst_31 : f32 to vector<2x2xf32>
    %69 = arith.minimumf %68, %67 : vector<2x2xf32>
    %70 = math.exp %69 : vector<2x2xf32>
    %c0_32 = arith.constant 0 : index
    %c0_33 = arith.constant 0 : index
    %71 = vector.load %arg2[%c0_32, %c0_33] : memref<2x2xf32, #tpu.memory_space<vmem>>, vector<2x2xf32>
    %72 = arith.mulf %70, %71 : vector<2x2xf32>
    %73 = arith.addf %64, %72 : vector<2x2xf32>
    %74 = math.tanh %73 : vector<2x2xf32>
    %75 = vector.broadcast %13 : vector<1x2xf32> to vector<2x2xf32>
    %76 = arith.mulf %74, %75 : vector<2x2xf32>
    %77 = vector.broadcast %14 : vector<1x2xf32> to vector<2x2xf32>
    %78 = arith.addf %76, %77 : vector<2x2xf32>
    %cst_34 = arith.constant -5.000000e-01 : f32
    %79 = vector.broadcast %cst_34 : f32 to vector<2x2xf32>
    %80 = arith.mulf %79, %71 : vector<2x2xf32>
    %81 = arith.mulf %80, %71 : vector<2x2xf32>
    %82 = arith.subf %81, %69 : vector<2x2xf32>
    %cst_35 = arith.constant 0.918938517 : f32
    %83 = vector.broadcast %cst_35 : f32 to vector<2x2xf32>
    %84 = arith.subf %82, %83 : vector<2x2xf32>
    %85 = arith.mulf %74, %74 : vector<2x2xf32>
    %cst_36 = arith.constant 1.000000e+00 : f32
    %86 = vector.broadcast %cst_36 : f32 to vector<2x2xf32>
    %87 = arith.subf %86, %85 : vector<2x2xf32>
    %88 = vector.broadcast %13 : vector<1x2xf32> to vector<2x2xf32>
    %89 = arith.mulf %88, %87 : vector<2x2xf32>
    %cst_37 = arith.constant 9.99999997E-7 : f32
    %90 = vector.broadcast %cst_37 : f32 to vector<2x2xf32>
    %91 = arith.addf %89, %90 : vector<2x2xf32>
    %92 = math.log %91 : vector<2x2xf32>
    %93 = arith.subf %84, %92 : vector<2x2xf32>
    %cst_38 = arith.constant dense<0.000000e+00> : vector<2xf32>
    %94 = vector.multi_reduction <add>, %93, %cst_38 [1] : vector<2x2xf32> to vector<2xf32>
    %95 = vector.shape_cast %94 : vector<2xf32> to vector<2x1xf32>
    %96 = math.tanh %64 : vector<2x2xf32>
    %97 = vector.broadcast %13 : vector<1x2xf32> to vector<2x2xf32>
    %98 = arith.mulf %96, %97 : vector<2x2xf32>
    %99 = vector.broadcast %14 : vector<1x2xf32> to vector<2x2xf32>
    %100 = arith.addf %98, %99 : vector<2x2xf32>
    %cst_39 = arith.constant 0.000000e+00 : f32
    %101 = vector.broadcast %cst_39 : f32 to vector<2x1xf32>
    %102 = tpu.concatenate %100, %78, %95, %69, %101 in 1 : vector<2x2xf32>, vector<2x2xf32>, vector<2x1xf32>, vector<2x2xf32>, vector<2x1xf32> -> vector<2x8xf32>
    %c0_40 = arith.constant 0 : index
    %c0_41 = arith.constant 0 : index
    %103 = vector.load %arg4[%c0_40, %c0_41] : memref<2x8xf32, #tpu.memory_space<vmem>>, vector<2x8xf32>
    tpu.vector_store %arg4[%c0_40, %c0_41], %102 {strides = array<i32>} : memref<2x8xf32, #tpu.memory_space<vmem>>, vector<2x8xf32>,
    return
  }
}

</mosaic_0001>

<bundles_post_ra>
// kernel: actor_forward.1
= control target key start
LH: loop header
LB: loop body
LE: loop exit
PB: predicated region body
PF: predicated region fallthrough
CT: control target
= control target key end

     0   :  { %vm84_vm0 = vcmask 326656   ;;  %vm160_vm1 = vcmask 1043456   ;;  %s462_s8 = smov 96   ;;  %s463_s9 = smov 32   ;;  %vm187_vm2 = vcmask 1041408   ;;  %vm197_vm3 = vcmask 261120   ;;  %s721_s3 = inlined_call_operand.vmem [shape: f32[408,128], index: 3, kind: input, shape index: {}]   ;;  %s722_s0 = inlined_call_operand.vmem [shape: f32[60,40], index: 0, kind: input, shape index: {}]   ;;  %s723_s1 = inlined_call_operand.vmem [shape: f32[2,4], index: 1, kind: input, shape index: {}]   ;;  %s724_s2 = inlined_call_operand.vmem [shape: f32[2,2], index: 2, kind: input, shape index: {}]   ;;  %s725_s4 = inlined_call_operand.vmem [shape: f32[2,8], index: 4, kind: output, shape index: {}]  }
   0x1   :  { %v21_v0 = vld [vmem:[%s721_s3 + $0x20] sm:$0xff]  ;;  %v20_v1 = vld [vmem:[%s721_s3 + $0x18] sm:$0xff]  ;;  %v19_v2 = vld [vmem:[%s721_s3 + $0x10] sm:$0xff]  ;;  %s464_s10 = smov 64   ;;  %vm199_vm4 = vcmask 523264   ;;  %vm201_vm5 = vcmask 785408  }
   0x2   :  { %120 = vmatpush.msra.mxu0 %v21_v0  ;;  %435 = vmatpush.msra.mxu2 %v21_v0  ;;  %v18_v3 = vld [vmem:[%s721_s3 + $0x8] sm:$0xff]  ;;  %v17_v4 = vld [vmem:[%s721_s3] sm:$0xff]  ;;  %v81_v8 = vld [vmem:[%s722_s0 + $0x30] sm:$0xff]  ;;  %vm256_vm6 = vcmask 31744   ;;  %s467_s15 = smov 3   ;;  %vm393_vm7 = vcmask 9216  }
   0x3   :  { %v75_v5 = vld [vmem:[%s722_s0] sm:$0xff]  ;;  %v80_v6 = vld [vmem:[%s722_s0 + $0x28] sm:$0xff]  ;;  %v77_v9 = vld [vmem:[%s722_s0 + $0x10] sm:$0xff]  ;;  %vm407_vm8 = vcmask 15360   ;;  %vm410_vm9 = vcmask 39936   ;;  %vm412_vm10 = vcmask 56320  }
   0x4   :  { %121 = vmatpush.msra.mxu0 %v20_v1  ;;  %436 = vmatpush.msra.mxu2 %v20_v1  ;;  %v76_v7 = vld [vmem:[%s722_s0 + $0x8] sm:$0xff]  ;;  %v82_v10 = vld [vmem:[%s722_s0 + $0x38] sm:$0xf]  ;;  %v79_v12 = vld [vmem:[%s722_s0 + $0x20] sm:$0xff]  ;;  %vm414_vm11 = vcmask 58368  }
   0x5   :  { %v78_v11 = vld [vmem:[%s722_s0 + $0x18] sm:$0xff]  ;;  %v446_v17 = vld [vmem:[%s721_s3 + $0x190] ss:$0 sm:$0xff]  ;;  %v37_v20 = vld [vmem:[%s721_s3 + $0xa0] sm:$0xff] }
   0x6   :  { %122 = vmatpush.msra.mxu0 %v19_v2  ;;  %437 = vmatpush.msra.mxu2 %v19_v2  ;;  %v36_v21 = vld [vmem:[%s721_s3 + $0x98] sm:$0xff]  ;;  %v35_v24 = vld [vmem:[%s721_s3 + $0x90] sm:$0xff]  ;;  %v34_v26 = vld [vmem:[%s721_s3 + $0x88] sm:$0xff] }
   0x7   :  { %203 = vmatpush.msra.mxu1 %v37_v20  ;;  %v33_v28 = vld [vmem:[%s721_s3 + $0x80] sm:$0xff]  ;;  %v32_v34 = vld [vmem:[%s721_s3 + $0x78] sm:$0xff]  ;;  %v31_v37 = vld [vmem:[%s721_s3 + $0x70] sm:$0xff] }
   0x8   :  { %123 = vmatpush.msra.mxu0 %v18_v3  ;;  %438 = vmatpush.msra.mxu2 %v18_v3  ;;  %v30_v45 = vld [vmem:[%s721_s3 + $0x68] sm:$0xff]  ;;  %v29_v49 = vld [vmem:[%s721_s3 + $0x60] sm:$0xff]  ;;  %v28_v1 = vld [vmem:[%s721_s3 + $0x58] sm:$0xff] }
   0x9   :  { %204 = vmatpush.msra.mxu1 %v36_v21  ;;  %v27_v2 = vld [vmem:[%s721_s3 + $0x50] sm:$0xff]  ;;  %v26_v3 = vld [vmem:[%s721_s3 + $0x48] sm:$0xff]  ;;  %v48_v20 = vld [vmem:[%s721_s3 + $0xf8] sm:$0xff] }
   0xa   :  { %124 = vmatpush.msra.mxu0 %v17_v4  ;;  %439 = vmatpush.msra.mxu2 %v17_v4  ;;  %v25_v4 = vld [vmem:[%s721_s3 + $0x40] sm:$0xff] }
   0xb   :  { %420 = vmatmul.msk.f32.vlgmr.msra.gmra.mxu0 %vm84_vm0, %v75_v5  ;;  %425 = vmatmul.msk.f32.vlgmr.msra.gmra.mxu2 %vm84_vm0, %v80_v6  ;;  %v24_v5 = vld [vmem:[%s721_s3 + $0x38] sm:$0xff]  ;;  %v23_v6 = vld [vmem:[%s721_s3 + $0x30] sm:$0xff]  ;;  %v255_v21 = vld [vmem:[%s723_s1] sm:$0x3] }
   0xc   :  { %205 = vmatpush.msra.mxu1 %v35_v24  ;;  %v45_v24 = vld [vmem:[%s721_s3 + $0xe0] sm:$0xff] }
   0xe   :  { %206 = vmatpush.msra.mxu1 %v34_v26 }
  0x10   :  { %207 = vmatpush.msra.mxu1 %v33_v28 }
  0x12   :  { %208 = vmatpush.msra.mxu1 %v32_v34  ;;  %v58_v34 = vld [vmem:[%s721_s3 + $0x148] sm:$0xff] }
  0x13   :  { %421 = vmatmul.msk.f32.gmra.mxu0 %vm84_vm0, %v76_v7  ;;  %426 = vmatmul.msk.f32.gmra.mxu2 %vm84_vm0, %v81_v8  ;;  %v22_v7 = vld [vmem:[%s721_s3 + $0x28] sm:$0xff] }
  0x14   :  { %209 = vmatpush.msra.mxu1 %v31_v37  ;;  %321 = vmatpush.msrb.mxu2 %v58_v34  ;;  %v55_v37 = vld [vmem:[%s721_s3 + $0x130] sm:$0xff] }
  0x16   :  { %210 = vmatpush.msra.mxu1 %v30_v45  ;;  %v51_v45 = vld [vmem:[%s721_s3 + $0x110] sm:$0xff] }
  0x18   :  { %211 = vmatpush.msra.mxu1 %v29_v49  ;;  %v63_v49 = vld [vmem:[%s721_s3 + $0x170] sm:$0xff] }
  0x1a   :  { %212 = vmatpush.msra.mxu1 %v28_v1  ;;  %v451_v1 = vld [vmem:[%s721_s3 + $0x195] ss:$0 sm:$0xff] }
  0x1b   :  { %422 = vmatmul.msk.f32.gmra.mxu0 %vm84_vm0, %v77_v9  ;;  %427 = vmatmul.msk.f32.gmra.mxu2 %vm84_vm0, %v82_v10 }
  0x1c   :  { %213 = vmatpush.msra.mxu1 %v27_v2 }
  0x1e   :  { %214 = vmatpush.msra.mxu1 %v26_v3 }
  0x20   :  { %215 = vmatpush.msra.mxu1 %v25_v4 }
  0x22   :  { %216 = vmatpush.msra.mxu1 %v24_v5 }
  0x23   :  { %423 = vmatmul.msk.f32.gmra.mxu0 %vm84_vm0, %v78_v11 }
  0x24   :  { %217 = vmatpush.msra.mxu1 %v23_v6 }
  0x26   :  { %218 = vmatpush.msra.mxu1 %v22_v7 }
  0x2b   :  { %424 = vmatmul.msk.f32.gmra.mxu0 %vm84_vm0, %v79_v12 }
  0x88   :  { %v126_v13 = vpop.f32.mrf.mxu0 }
  0x89   :  { %v127_v31 = vadd.f32 %v446_v17, %v126_v13 }
  0x8b   :  { %v150_v42 = vmax.f32 %v127_v31, 0.0  ;;  %v44_v31 = vld [vmem:[%s721_s3 + $0xd8] sm:$0xff] }
  0x8e   :  { %v141_v15 = vpop.f32.mrf.mxu2 }
  0x8f   :  { %v142_v30 = vadd.f32 %v446_v17, %v141_v15  ;;  %v40_v15 = vld [vmem:[%s721_s3 + $0xb8] sm:$0xff] }
  0x90   :  { %v129_v14 = vpop.f32.mrf.mxu0 }
  0x91   :  { %v130_v22 = vadd.f32 %v446_v17, %v129_v14  ;;  %v155_v38 = vmax.f32 %v142_v30, 0.0  ;;  %v41_v14 = vld [vmem:[%s721_s3 + $0xc0] sm:$0xff] }
  0x92   :  { %246 = vmatpush.msrb.mxu1 %v41_v14 }
  0x93   :  { %v151_v27 = vmax.f32 %v130_v22, 0.0  ;;  %v173_v50 = vrot.slane %v155_v38, 4  ;;  %v47_v22 = vld [vmem:[%s721_s3 + $0xf0] sm:$0xff]  ;;  %v54_v38 = vld [vmem:[%s721_s3 + $0x128] sm:$0xff] }
  0x94   :  { %247 = vmatpush.msrb.mxu1 %v40_v15 }
  0x95   :  { %v161_v35 = vrot.slane %v151_v27, 4 }
  0x96   :  { %v144_v18 = vpop.f32.mrf.mxu2 }
  0x97   :  { %v145_v44 = vadd.f32 %v446_v17, %v144_v18  ;;  %v50_v18 = vld [vmem:[%s721_s3 + $0x108] sm:$0xf] }
  0x98   :  { %v132_v16 = vpop.f32.mrf.mxu0  ;;  %429 = vmatpush.msk.msra.mxu3 %vm160_vm1, %v50_v18 }
  0x99   :  { %v133_v19 = vadd.f32 %v446_v17, %v132_v16  ;;  %v156_v55 = vmax.f32 %v145_v44, 0.0  ;;  %v39_v16 = vld [vmem:[%s721_s3 + $0xb0] sm:$0xff]  ;;  %430 = vmatmul.msk.f32.vlgmr.msra.gmra.mxu3 %vm256_vm6, %v255_v21  ;;  %v52_v44 = vld [vmem:[%s721_s3 + $0x118] sm:$0xff] }
  0x9a   :  { %248 = vmatpush.msrb.mxu1 %v39_v16  ;;  %v453_v16 = vld [vmem:[%s721_s3 + $0x197] ss:$0 sm:$0xff] }
  0x9b   :  { %v152_v25 = vmax.f32 %v133_v19, 0.0  ;;  %v49_v19 = vld [vmem:[%s721_s3 + $0x100] sm:$0xff] }
  0x9c   :  { %294 = vmatpush.msrb.mxu3 %v49_v19 }
  0x9d   :  { %v162_v29 = vrot.slane %v152_v25, 4 }
  0x9e   :  { %v147_v33 = vpop.f32.mrf.mxu2  ;;  %295 = vmatpush.msrb.mxu3 %v48_v20 }
  0x9f   :  { %v163_v39 = vsel %vm160_vm1, %v161_v35, %v162_v29  ;;  %v148_v41 = vadd.f32 %v446_v17, %v147_v33  ;;  %v167_v46 = vmax.f32 %v151_v27, %v162_v29  ;;  %v447_v27 = vld [vmem:[%s721_s3 + $0x191] ss:$0 sm:$0xff]  ;;  %v42_v33 = vld [vmem:[%s721_s3 + $0xc8] sm:$0xff]  ;;  %v57_v35 = vld [vmem:[%s721_s3 + $0x140] sm:$0xff] }
  0xa0   :  { %v135_v23 = vpop.f32.mrf.mxu0  ;;  %v166_v48 = vmax.f32 %v150_v42, %v163_v39  ;;  %296 = vmatpush.msrb.mxu3 %v47_v22  ;;  %322 = vmatpush.msrb.mxu2 %v57_v35  ;;  %v53_v39 = vld [vmem:[%s721_s3 + $0x120] sm:$0xff] }
  0xa1   :  { %v136_v32 = vadd.f32 %v446_v17, %v135_v23  ;;  %v157_v53 = vmax.f32 %v148_v41, 0.0  ;;  %v46_v23 = vld [vmem:[%s721_s3 + $0xe8] sm:$0xff] }
  0xa2   :  { %297 = vmatpush.msrb.mxu3 %v46_v23 }
  0xa3   :  { %v153_v43 = vmax.f32 %v136_v32, 0.0  ;;  %v43_v32 = vld [vmem:[%s721_s3 + $0xd0] sm:$0xff] }
  0xa4   :  { %298 = vmatpush.msrb.mxu3 %v45_v24 }
  0xa5   :  { %v168_v54 = vmax.f32 %v166_v48, %v153_v43  ;;  %v64_v48 = vld [vmem:[%s721_s3 + $0x178] sm:$0xff] }
  0xa6   :  { %299 = vmatpush.msrb.mxu3 %v44_v31 }
  0xa8   :  { %v138_v36 = vpop.f32.mrf.mxu0  ;;  %300 = vmatpush.msrb.mxu3 %v43_v32 }
  0xa9   :  { %v139_v40 = vadd.f32 %v446_v17, %v138_v36  ;;  %v38_v17 = vld [vmem:[%s721_s3 + $0xa8] sm:$0xff]  ;;  %v56_v36 = vld [vmem:[%s721_s3 + $0x138] sm:$0xff] }
  0xaa   :  { %249 = vmatpush.msrb.mxu1 %v38_v17  ;;  %301 = vmatpush.msrb.mxu3 %v42_v33 }
  0xab   :  { %v154_v47 = vmax.f32 %v139_v40, 0.0  ;;  %323 = vmatpush.msrb.mxu2 %v56_v36  ;;  %v448_v40 = vld [vmem:[%s721_s3 + $0x192] ss:$0 sm:$0xff] }
  0xad   :  { %v169_v51 = vmax.f32 %v167_v46, %v154_v47  ;;  %v172_v52 = vrot.slane %v154_v47, 4  ;;  %324 = vmatpush.msrb.mxu2 %v55_v37  ;;  %v66_v46 = vld [vmem:[%s721_s3 + $0x188] sm:$0xff]  ;;  %v65_v47 = vld [vmem:[%s721_s3 + $0x180] sm:$0xff] }
  0xae   :  { %346 = vmatpush.msra.mxu3 %v66_v46 }
  0xaf   :  { %v174_v56 = vsel %vm160_vm1, %v172_v52, %v173_v50  ;;  %v178_v57 = vmax.f32 %v169_v51, %v173_v50  ;;  %325 = vmatpush.msrb.mxu2 %v54_v38  ;;  %v62_v50 = vld [vmem:[%s721_s3 + $0x168] sm:$0xff]  ;;  %v449_v52 = vld [vmem:[%s721_s3 + $0x193] ss:$0 sm:$0xff] }
  0xb0   :  { %v177_v58 = vmax.f32 %v168_v54, %v174_v56  ;;  %347 = vmatpush.msra.mxu3 %v65_v47 }
  0xb1   :  { %v180_v59 = vmax.f32 %v178_v57, %v157_v53  ;;  %326 = vmatpush.msrb.mxu2 %v53_v39  ;;  %v61_v57 = vld [vmem:[%s721_s3 + $0x160] sm:$0xff] }
  0xb2   :  { %v179_v60 = vmax.f32 %v177_v58, %v156_v55  ;;  %348 = vmatpush.msra.mxu3 %v64_v48  ;;  %v60_v58 = vld [vmem:[%s721_s3 + $0x158] sm:$0xff] }
  0xb3   :  { %194 = vrot.lane.b32.xlu1 %v180_v59, %s462_s8  ;;  %v189_v62 = vrot.slane %v180_v59, 6  ;;  %327 = vmatpush.msrb.mxu2 %v52_v44  ;;  %v59_v59 = vld [vmem:[%s721_s3 + $0x150] sm:$0xff] }
  0xb4   :  { %v182_v61 = vrot.slane %v179_v60, 2  ;;  %v188_v63 = vrot.slane %v179_v60, 6  ;;  %349 = vmatpush.msra.mxu3 %v63_v49 }
  0xb5   :  { %328 = vmatpush.msrb.mxu2 %v51_v45 }
  0xb6   :  { %183 = vrot.lane.b32.xlu0 %v182_v61, %s463_s9  ;;  %v190_v0 = vsel %vm187_vm2, %v188_v63, %v189_v62  ;;  %350 = vmatpush.msra.mxu3 %v62_v50  ;;  %v450_v61 = vld [vmem:[%s721_s3 + $0x194] ss:$0 sm:$0xff] }
  0xb8   :  { %351 = vmatpush.msra.mxu3 %v61_v57 }
  0xba   :  { %352 = vmatpush.msra.mxu3 %v60_v58 }
  0xbc   :  { %353 = vmatpush.msra.mxu3 %v59_v59 }
  0xbe   :  { %191 = vrot.lane.b32.xlu0 %v190_v0, %s464_s10  ;;  %s465_s10 = smov 2  }
 0x11c   :  { %v280_v51 = vpop.f32.mrf.mxu3 }
 0x125   :  { %v195_v11 = vpop.permute.xlu1 %194 }
 0x128   :  { %v184_v8 = vpop.permute.xlu0 %183 }
 0x129   :  { %v198_v9 = vsel %vm197_vm3, %v179_v60, %v184_v8  ;;  %v362_v60 = vld [vmem:[%s724_s2] sm:$0x3]  ;;  %s466_s2 = smov 126  }
 0x12a   :  { %364 = vrot.lane.b32.xlu1 %v362_v60, %s465_s10  ;;  %v378_v19 = vmul.f32 -0.5, %v362_v60 }
 0x12c   :  { %v379_v22 = vmul.f32 %v378_v19, %v362_v60 }
 0x130   :  { %v192_v10 = vpop.permute.xlu0 %191 }
 0x131   :  { %v200_v12 = vsel %vm199_vm4, %v198_v9, %v192_v10 }
 0x132   :  { %v202_v13 = vsel %vm201_vm5, %v200_v12, %v195_v11  ;;  %v452_v12 = vld [vmem:[%s721_s3 + $0x196] ss:$0 sm:$0xff] }
 0x133   :  { %219 = vmatmul.f32.vlgmr.msra.gmra.mxu1 %v202_v13 }
 0x19c   :  { %v365_v7 = vpop.permute.xlu1 %364 }
 0x1b0   :  { %v220_v25 = vpop.f32.mrf.mxu1 }
 0x1b1   :  { %v224_v26 = vrot.slane %v220_v25, 2 }
 0x1b3   :  { %v226_v28 = vmax.f32 %v220_v25, %v224_v26 }
 0x1b5   :  { %v228_v29 = vadd.f32 %v447_v27, %v226_v28 }
 0x1b7   :  { %v229_v30 = vmax.f32 %v228_v29, 0.0 }
 0x1b9   :  { %428 = vmatmul.msk.f32.vlgmr.msrb.gmra.mxu1 %vm197_vm3, %v229_v30 }
 0x236   :  { %v251_v41 = vpop.f32.mrf.mxu1 }
 0x237   :  { %v252_v42 = vadd.f32 %v448_v40, %v251_v41 }
 0x239   :  { %v254_v43 = vmax.f32 %v252_v42, 0.0 }
 0x23b   :  { %431 = vmatmul.msk.f32.vlgmr.msrb.gmra.mxu3 %vm199_vm4, %v254_v43 }
 0x2be   :  { %v303_v53 = vpop.f32.mrf.mxu3 }
 0x2bf   :  { %v304_v54 = vadd.f32 %v303_v53, %v280_v51 }
 0x2c1   :  { %v307_v55 = vadd.f32 %v449_v52, %v304_v54 }
 0x2c3   :  { %v308_v56 = vmax.f32 %v307_v55, 0.0 }
 0x2c5   :  { %432 = vmatmul.msk.f32.vlgmr.msrb.gmra.mxu2 %vm199_vm4, %v308_v56 }
 0x348   :  { %v330_v62 = vpop.f32.mrf.mxu2 }
 0x349   :  { %v331_v63 = vadd.f32 %v450_v61, %v330_v62 }
 0x34b   :  { %v333_v0 = vmax.f32 %v331_v63, 0.0 }
 0x34d   :  { %433 = vmatmul.msk.f32.vlgmr.msra.gmra.mxu3 %vm199_vm4, %v333_v0 }
 0x3d0   :  { %v355_v2 = vpop.f32.mrf.mxu3 }
 0x3d1   :  { %v356_v3 = vadd.f32 %v451_v1, %v355_v2 }
 0x3d3   :  { %v358_v4 = vmax.f32 %v356_v3, -20.0 }
 0x3d5   :  { %v359_v5 = vmin.f32 %v358_v4, 2.0 }
 0x3d7   :  { %v360_v6 = vmul.f32 1.442695, %v359_v5 }
 0x3d9   :  { %454 = vpow2.f32 %v360_v6 }
 0x3df   :  { %v455_v8 = vpop.eup %454 }
 0x3e0   :  { %v367_v9 = vmul.f32 %v455_v8, %v365_v7 }
 0x3e2   :  { %369 = vrot.lane.b32.xlu2 %v367_v9, %s466_s2 }
 0x3ea   :  { %381 = vrot.lane.b32.xlu2 %v359_v5, %s466_s2 }
 0x3f2   :  { %404 = vrot.lane.b32.xlu2 %v359_v5, %s467_s15 }
 0x43c   :  { %v370_v10 = vpop.permute.xlu2 %369 }
 0x43d   :  { %v372_v11 = vadd.f32 %v370_v10, %v356_v3 }
 0x43f   :  { %456 = vtanh.f32 %v372_v11 }
 0x444   :  { %v382_v23 = vpop.permute.xlu2 %381 }
 0x445   :  { %v457_v13 = vpop.eup %456  ;;  %v384_v24 = vsub.f32 %v379_v22, %v382_v23 }
 0x446   :  { %v386_v14 = vmul.f32 %v457_v13, %v457_v13  ;;  %v375_v15 = vmul.f32 %v457_v13, %v452_v12 }
 0x447   :  { %v434_v26 = vadd.f32 -0.9189385, %v384_v24 }
 0x448   :  { %v387_v17 = vsub.f32 1.0, %v386_v14  ;;  %v377_v18 = vadd.f32 %v453_v16, %v375_v15 }
 0x44a   :  { %401 = vrot.lane.b32.xlu1 %v377_v18, %s465_s10  ;;  %v388_v20 = vmul.f32 %v452_v12, %v387_v17 }
 0x44c   :  { %v389_v21 = vadd.f32 1e-06, %v388_v20  ;;  %v405_v36 = vpop.permute.xlu2 %404 }
 0x44e   :  { %458 = vlog2.f32 %v389_v21 }
 0x44f   :  { %460 = vtanh.f32 %v356_v3 }
 0x454   :  { %v459_v25 = vpop.eup %458 }
 0x455   :  { %v391_v27 = vmul.f32 0.6931472, %v459_v25  ;;  %v461_v30 = vpop.eup %460 }
 0x456   :  { %v398_v31 = vmul.f32 %v461_v30, %v452_v12 }
 0x457   :  { %v392_v28 = vsub.f32 %v434_v26, %v391_v27 }
 0x458   :  { %v399_v33 = vadd.f32 %v453_v16, %v398_v31 }
 0x459   :  { %v394_v29 = vsel %vm393_vm7, %v392_v28, 0.0 }
 0x45a   :  { %395 = vadd.xlane.f32.xlu0 %v394_v29 }
 0x4bc   :  { %v402_v32 = vpop.permute.xlu1 %401 }
 0x4bd   :  { %v408_v34 = vsel %vm407_vm8, %v399_v33, %v402_v32 }
 0x4cd   :  { %v396_v35 = vpop.xlane.xlu0 %395 }
 0x4ce   :  { %v409_v37 = vsel %vm256_vm6, %v408_v34, %v396_v35 }
 0x4cf   :  { %v411_v38 = vsel %vm410_vm9, %v409_v37, %v405_v36 }
 0x4d0   :  { %v413_v39 = vsel %vm412_vm10, %v411_v38, 0.0 }
 0x4d1   :  { %415 = vst.msk [vmem:[%s725_s4] sm:$0x3] %vm414_vm11, %v413_v39 }

</bundles_post_ra>
